<compile_context>
chip_gen: v5e
topology: v5e:2x2
jax: 0.10.0
libtpu: 0.0.40
codegen_flags: <defaults>
</compile_context>

<pallas_src>
import functools

import jax
import jax.numpy as jnp
from jax.experimental import pallas as pl
from jax.experimental.pallas import tpu as pltpu


def _net_kernel(x_ref, w1_ref, b1_ref, w2_ref, b2_ref, o_ref):
    # In-kernel f32 -> bf16 cast of the activation tile (VPU pack, no extra
    # HBM pass in the wrapper).
    x = x_ref[...].astype(jnp.bfloat16)
    # fc1: (TB, in)bf16 @ (in, h1_pad)bf16 -> f32 accumulation on the MXU.
    h = jnp.dot(x, w1_ref[...], preferred_element_type=jnp.float32)
    # bias + ReLU in f32 on the VPU (padded h1 lanes stay exactly 0).
    h = jnp.maximum(h + b1_ref[...], 0.0)
    # out: (TB, h1_pad)bf16 @ (h1_pad, out_pad)bf16 -> f32 accumulation.
    y = jnp.dot(h.astype(jnp.bfloat16), w2_ref[...],
                preferred_element_type=jnp.float32)
    o_ref[...] = (y + b2_ref[...]).astype(o_ref.dtype)


def _round_up(n, m):
    return ((n + m - 1) // m) * m


def init_net_params(key, in_states, h1_nodes, out_actions, dtype=jnp.float32):
    """PyTorch nn.Linear-style params: W is (out_features, in_features)."""
    k1, k2, k3, k4 = jax.random.split(key, 4)
    bound1 = 1.0 / jnp.sqrt(jnp.asarray(in_states, dtype))
    bound2 = 1.0 / jnp.sqrt(jnp.asarray(h1_nodes, dtype))
    w1 = jax.random.uniform(k1, (h1_nodes, in_states), dtype, -bound1, bound1)
    b1 = jax.random.uniform(k2, (h1_nodes,), dtype, -bound1, bound1)
    w2 = jax.random.uniform(k3, (out_actions, h1_nodes), dtype, -bound2, bound2)
    b2 = jax.random.uniform(k4, (out_actions,), dtype, -bound2, bound2)
    return w1, b1, w2, b2


def prepare_params(w1, b1, w2, b2):
    """One-time conversion to kernel-ready layout.

    Returns (w1t_bf16 (in, h1_pad), b1_f32 (1, h1_pad),
             w2t_bf16 (h1_pad, out_pad), b2_f32 (1, out_pad), out_actions).
    h1 and out_actions are zero-padded to 128 lanes so both matmuls and the
    output store run on lane-dense (.,128) tiles. Zero padding is exact:
    relu(0+0)=0 and zero W2 rows/cols contribute nothing; padded output
    columns are sliced off by the wrapper.
    """
    out_actions, h1 = w2.shape
    in_states = w1.shape[1]
    h1_pad = _round_up(max(h1, 128), 128)
    out_pad = _round_up(max(out_actions, 128), 128)

    w1t = jnp.zeros((in_states, h1_pad), jnp.bfloat16)
    w1t = w1t.at[:, :h1].set(jnp.asarray(w1.T, jnp.bfloat16))
    b1r = jnp.zeros((1, h1_pad), jnp.float32)
    b1r = b1r.at[0, :h1].set(jnp.asarray(b1, jnp.float32))

    w2t = jnp.zeros((h1_pad, out_pad), jnp.bfloat16)
    w2t = w2t.at[:h1, :out_actions].set(jnp.asarray(w2.T, jnp.bfloat16))
    b2r = jnp.zeros((1, out_pad), jnp.float32)
    b2r = b2r.at[0, :out_actions].set(jnp.asarray(b2, jnp.float32))
    return w1t, b1r, w2t, b2r, out_actions


@functools.partial(jax.jit, static_argnames=("out_actions", "block_batch"))
def net_forward(x, w1t, b1, w2t, b2, *, out_actions, block_batch=512):
    """Fused MLP forward: relu(x @ W1 + b1) @ W2 + b2 (pre-transposed weights)."""
    batch, in_states = x.shape
    h1_pad = w1t.shape[1]
    out_pad = w2t.shape[1]

    # Batch tile: multiple of 8 (sublanes), no wrapper-side padding of x.
    pad8 = _round_up(batch, 8)
    tb = min(block_batch, pad8)
    if pad8 > 256 and pl.cdiv(batch, tb) < 2:
        # Ensure >= 2 grid steps so v7x's two TensorCores both get work
        # (no effect on single-TC v5e / v6e).
        tb = _round_up(pl.cdiv(pad8, 2), 8)
    grid = (pl.cdiv(batch, tb),)

    # Advisory cost hint for XLA scheduling around this custom call.
    flops = 2 * batch * (in_states * h1_pad + h1_pad * out_pad)
    bytes_accessed = (batch * in_states * 4      # x (f32 read)
                      + w1t.size * 2 + b1.size * 4
                      + w2t.size * 2 + b2.size * 4
                      + batch * out_pad * 4)     # y (f32 write)
    cost = pl.CostEstimate(flops=flops, transcendentals=0,
                           bytes_accessed=bytes_accessed)

    y = pl.pallas_call(
        _net_kernel,
        out_shape=jax.ShapeDtypeStruct((batch, out_pad), jnp.float32),
        grid_spec=pl.GridSpec(
            grid=grid,
            in_specs=[
                pl.BlockSpec((tb, in_states), lambda i: (i, 0)),   # x tile (f32)
                pl.BlockSpec((in_states, h1_pad), lambda i: (0, 0)),  # W1 resident
                pl.BlockSpec((1, h1_pad), lambda i: (0, 0)),          # b1 resident
                pl.BlockSpec((h1_pad, out_pad), lambda i: (0, 0)),    # W2 resident
                pl.BlockSpec((1, out_pad), lambda i: (0, 0)),         # b2 resident
            ],
            out_specs=pl.BlockSpec((tb, out_pad), lambda i: (i, 0)),
        ),
        compiler_params=pltpu.CompilerParams(
            dimension_semantics=("parallel",)),
        cost_estimate=cost,
    )(x, w1t, b1, w2t, b2)
    # Padded lanes are sliced off under the same jit (fuses with the store).
    return y[:, :out_actions]


def net_forward_ref(x, w1, b1, w2, b2):
    """Pure-JAX f32 reference (PyTorch layout) for correctness checking."""
    h = jnp.maximum(x @ w1.T + b1, 0.0)
    return h @ w2.T + b2


if __name__ == "__main__":
    # Small shapes consistent with the DQN MLP (state one-hot -> hidden -> actions).
    batch = 8
    in_states = 64
    h1_nodes = 32
    out_actions = 6

    key = jax.random.PRNGKey(0)
    kx, kp = jax.random.split(key)
    x = jax.random.uniform(kx, (batch, in_states), jnp.float32)
    w1, b1, w2, b2 = init_net_params(kp, in_states, h1_nodes, out_actions)

    # One-time param prep (transpose / bf16 cast / lane-padding) outside the hot path.
    w1t, b1r, w2t, b2r, n_act = prepare_params(w1, b1, w2, b2)

    y = net_forward(x, w1t, b1r, w2t, b2r, out_actions=n_act)
    y = jax.block_until_ready(y)

    y_ref = net_forward_ref(x, w1, b1, w2, b2)
    assert y.shape == (batch, out_actions)
    # bf16 MXU inputs with f32 accumulation -> loosened tolerance vs f32 reference.
    assert jnp.allclose(y, y_ref, atol=3e-2, rtol=3e-2), (
        float(jnp.max(jnp.abs(y - y_ref))))

    print("KERNEL_OK")
</pallas_src>

<mosaic_0001>
module attributes {stable_mosaic.version = 11 : i64} {
  func.func @_net_kernel(%arg0: i32, %arg1: memref<8x64xf32, #tpu.memory_space<vmem>>, %arg2: memref<64x128xbf16, #tpu.memory_space<vmem>>, %arg3: memref<1x128xf32, #tpu.memory_space<vmem>>, %arg4: memref<128x128xbf16, #tpu.memory_space<vmem>>, %arg5: memref<1x128xf32, #tpu.memory_space<vmem>>, %arg6: memref<8x128xf32, #tpu.memory_space<vmem>>) attributes {dimension_semantics = [#tpu.dimension_semantics<parallel>], iteration_bounds = array<i64: 1>, scalar_prefetch = 0 : i64, scratch_operands = 0 : i64, tpu.core_type = #tpu.core_type<tc>, window_params = [{transform_indices = @transform_0, window_bounds = array<i64: 8, 64>}, {pipeline_mode = #tpu.pipeline_mode<synchronous>, transform_indices = @transform_1, window_bounds = array<i64: 64, 128>}, {pipeline_mode = #tpu.pipeline_mode<synchronous>, transform_indices = @transform_2, window_bounds = array<i64: 1, 128>}, {pipeline_mode = #tpu.pipeline_mode<synchronous>, transform_indices = @transform_3, window_bounds = array<i64: 128, 128>}, {pipeline_mode = #tpu.pipeline_mode<synchronous>, transform_indices = @transform_4, window_bounds = array<i64: 1, 128>}, {transform_indices = @transform_5, window_bounds = array<i64: 8, 128>}]} {
    %c0 = arith.constant 0 : index
    %c0_0 = arith.constant 0 : index
    %0 = vector.load %arg1[%c0, %c0_0] : memref<8x64xf32, #tpu.memory_space<vmem>>, vector<8x64xf32>
    %1 = arith.truncf %0 : vector<8x64xf32> to vector<8x64xbf16>
    %c0_1 = arith.constant 0 : index
    %c0_2 = arith.constant 0 : index
    %2 = vector.load %arg2[%c0_1, %c0_2] : memref<64x128xbf16, #tpu.memory_space<vmem>>, vector<64x128xbf16>
    %cst = arith.constant dense<0.000000e+00> : vector<8x128xf32>
    %3 = tpu.matmul %1, %2, %cst {dimension_numbers = #tpu.dot_dimension_numbers<[1], [0], [0], [1], [0, 0, 1, 1], [], []>} : vector<8x64xbf16>, vector<64x128xbf16>, vector<8x128xf32> -> vector<8x128xf32>
    %c0_3 = arith.constant 0 : index
    %c0_4 = arith.constant 0 : index
    %4 = vector.load %arg3[%c0_3, %c0_4] : memref<1x128xf32, #tpu.memory_space<vmem>>, vector<1x128xf32>
    %5 = vector.broadcast %4 : vector<1x128xf32> to vector<8x128xf32>
    %6 = arith.addf %3, %5 : vector<8x128xf32>
    %cst_5 = arith.constant 0.000000e+00 : f32
    %7 = vector.broadcast %cst_5 : f32 to vector<8x128xf32>
    %8 = arith.maximumf %6, %7 : vector<8x128xf32>
    %9 = arith.truncf %8 : vector<8x128xf32> to vector<8x128xbf16>
    %c0_6 = arith.constant 0 : index
    %c0_7 = arith.constant 0 : index
    %10 = vector.load %arg4[%c0_6, %c0_7] : memref<128x128xbf16, #tpu.memory_space<vmem>>, vector<128x128xbf16>
    %cst_8 = arith.constant dense<0.000000e+00> : vector<8x128xf32>
    %11 = tpu.matmul %9, %10, %cst_8 {dimension_numbers = #tpu.dot_dimension_numbers<[1], [0], [0], [1], [0, 0, 1, 1], [], []>} : vector<8x128xbf16>, vector<128x128xbf16>, vector<8x128xf32> -> vector<8x128xf32>
    %c0_9 = arith.constant 0 : index
    %c0_10 = arith.constant 0 : index
    %12 = vector.load %arg5[%c0_9, %c0_10] : memref<1x128xf32, #tpu.memory_space<vmem>>, vector<1x128xf32>
    %13 = vector.broadcast %12 : vector<1x128xf32> to vector<8x128xf32>
    %14 = arith.addf %11, %13 : vector<8x128xf32>
    %c0_11 = arith.constant 0 : index
    %c0_12 = arith.constant 0 : index
    %15 = vector.load %arg6[%c0_11, %c0_12] : memref<8x128xf32, #tpu.memory_space<vmem>>, vector<8x128xf32>
    tpu.vector_store %arg6[%c0_11, %c0_12], %14 {strides = array<i32>} : memref<8x128xf32, #tpu.memory_space<vmem>>, vector<8x128xf32>,
    return
  }
  func.func @transform_0(%arg0: i32) -> (i32, i32) {
    %c0_i32 = arith.constant 0 : i32
    %c0_i32_0 = arith.constant 0 : i32
    return %arg0, %c0_i32 : i32, i32
  }
  func.func @transform_1(%arg0: i32) -> (i32, i32) {
    %c0_i32 = arith.constant 0 : i32
    %c0_i32_0 = arith.constant 0 : i32
    %c0_i32_1 = arith.constant 0 : i32
    return %c0_i32, %c0_i32_0 : i32, i32
  }
  func.func @transform_2(%arg0: i32) -> (i32, i32) {
    %c0_i32 = arith.constant 0 : i32
    %c0_i32_0 = arith.constant 0 : i32
    %c0_i32_1 = arith.constant 0 : i32
    return %c0_i32, %c0_i32_0 : i32, i32
  }
  func.func @transform_3(%arg0: i32) -> (i32, i32) {
    %c0_i32 = arith.constant 0 : i32
    %c0_i32_0 = arith.constant 0 : i32
    %c0_i32_1 = arith.constant 0 : i32
    return %c0_i32, %c0_i32_0 : i32, i32
  }
  func.func @transform_4(%arg0: i32) -> (i32, i32) {
    %c0_i32 = arith.constant 0 : i32
    %c0_i32_0 = arith.constant 0 : i32
    %c0_i32_1 = arith.constant 0 : i32
    return %c0_i32, %c0_i32_0 : i32, i32
  }
  func.func @transform_5(%arg0: i32) -> (i32, i32) {
    %c0_i32 = arith.constant 0 : i32
    %c0_i32_0 = arith.constant 0 : i32
    return %arg0, %c0_i32 : i32, i32
  }
}

</mosaic_0001>

<bundles_post_ra>
// kernel: net_forward.1
= control target key start
LH: loop header
LB: loop body
LE: loop exit
PB: predicated region body
PF: predicated region fallthrough
CT: control target
= control target key end

     0   :  { %10 = vsyncpa [#allocation3], 0  ;;  %s449_s0 = inlined_call_operand.hbm [shape: f32[8,64], index: 0, kind: input, shape index: {}]   ;;  %s450_s1 = inlined_call_operand.hbm [shape: bf16[64,128], index: 1, kind: input, shape index: {}]   ;;  %s451_s2 = inlined_call_operand.vmem [shape: f32[1,128], index: 2, kind: input, shape index: {}]   ;;  %s452_s3 = inlined_call_operand.hbm [shape: bf16[128,128], index: 3, kind: input, shape index: {}]   ;;  %s453_s4 = inlined_call_operand.vmem [shape: f32[1,128], index: 4, kind: input, shape index: {}]   ;;  %s454_s5 = inlined_call_operand.hbm [shape: f32[8,128], index: 5, kind: output, shape index: {}]  }
   0x1   :  { %11 = vsyncpa [#allocation6], 0  ;;  %s28_s20 = sshll.u32 %s450_s1, 4  ;;  %s29_s20 = int_to_ptr.hbm [resolvable:$true] %s28_s20 }
   0x2   :  { %12 = vsyncpa [#allocation4], 0  ;;  %s395_s21 = smov [#allocation5]   ;;  %s18_s25 = sshll.u32 %s449_s0, 4  ;;  %s19_s25 = int_to_ptr.hbm [resolvable:$true] %s18_s25 }
   0x3   :  { %s30_s22 = sshll.u32 %s395_s21, 4  ;;  %s396_s26 = smov 64   ;;  %s31_s22 = int_to_ptr.vmem [resolvable:$true] %s30_s22 }
   0x4   :  { %s397_s27 = smov 4   ;;  %s398_s28 = smov [#allocation2]  }
   0x5   :  { %36 = dma.hbm_to_vmem [thread:$0]  %s29_s20, 512, %s31_s22, [#allocation6], %s396_s26, %s396_s26, %s397_s27  }
   0x6   :  { %s20_s29 = sshll.u32 %s398_s28, 4  ;;  %s43_s7 = sshll.u32 %s452_s3, 4  ;;  %s21_s29 = int_to_ptr.vmem [resolvable:$true] %s20_s29  ;;  %s44_s7 = int_to_ptr.hbm [resolvable:$true] %s43_s7 }
   0x7   :  { %23 = dma.hbm_to_vmem [thread:$0]  %s19_s25, 128, %s21_s29, [#allocation3]  }
   0x8   :  { %s399_s1 = smov [#allocation7]  }
   0x9   :  { %s45_s8 = sshll.u32 %s399_s1, 4  ;;  %s46_s8 = int_to_ptr.vmem [resolvable:$true] %s45_s8 }
   0xa   :  { %51 = dma.hbm_to_vmem [thread:$0]  %s44_s7, 1024, %s46_s8, [#allocation6], %s396_s26, %s396_s26, %s397_s27  }
   0xb   :  { %389 = dma.done.wait [#allocation3], 128  }
   0xc   :  { %390 = vsyncadd [#allocation3], 4294967168 }
   0xd   :  { %391 = dma.done.wait [#allocation6], 1536  }
   0xe   :  { %392 = vsyncadd [#allocation6], 4294965760  ;;  %v276_v0 = vld [vmem:[#allocation5 + $0x18] sm:$0xff]  ;;  %v275_v2 = vld [vmem:[#allocation5 + $0x10] sm:$0xff]  ;;  %vm105_vm0 = vcmask 523264   ;;  %s400_s11 = smov [#allocation8]  }
   0xf   :  { %v284_v1 = vld [vmem:[#allocation7 + $0x38] sm:$0xff]  ;;  %113 = vmatpush.bf16.msra.mxu0 %v276_v0  ;;  %v283_v3 = vld [vmem:[#allocation7 + $0x30] sm:$0xff]  ;;  %v274_v4 = vld [vmem:[#allocation5 + $0x8] sm:$0xff]  ;;  %s211_s12 = sshll.u32 %s400_s11, 4  ;;  %s213_s15 = sshll.u32 %s454_s5, 4  ;;  %s212_s12 = int_to_ptr.vmem [resolvable:$true] %s211_s12  ;;  %s214_s15 = int_to_ptr.hbm [resolvable:$true] %s213_s15 }
  0x10   :  { %192 = vmatpush.bf16.msra.mxu1 %v284_v1  ;;  %v282_v5 = vld [vmem:[#allocation7 + $0x28] sm:$0xff]  ;;  %v273_v6 = vld [vmem:[#allocation5] sm:$0xff]  ;;  %v67_v7 = vld [vmem:[#allocation2] sm:$0xff] }
  0x11   :  { %v281_v8 = vld [vmem:[#allocation7 + $0x20] sm:$0xff]  ;;  %v68_v9 = vpack.c.bf16 %v67_v7, %v67_v7  ;;  %v280_v10 = vld [vmem:[#allocation7 + $0x18] sm:$0xff]  ;;  %v279_v11 = vld [vmem:[#allocation7 + $0x10] sm:$0xff] }
  0x12   :  { %v278_v12 = vld [vmem:[#allocation7 + $0x8] sm:$0xff]  ;;  %v277_v13 = vld [vmem:[#allocation7] sm:$0xff]  ;;  %v291_v14 = vld [vmem:[%s451_s2] ss:$0 sm:$0xff] }
  0x13   :  { %114 = vmatpush.bf16.msra.mxu0 %v275_v2  ;;  %v292_v20 = vld [vmem:[%s453_s4] ss:$0 sm:$0xff] }
  0x14   :  { %193 = vmatpush.bf16.msra.mxu1 %v283_v3 }
  0x17   :  { %115 = vmatpush.bf16.msra.mxu0 %v274_v4 }
  0x18   :  { %194 = vmatpush.bf16.msra.mxu1 %v282_v5 }
  0x1b   :  { %116 = vmatpush.bf16.msra.mxu0 %v273_v6 }
  0x1c   :  { %195 = vmatpush.bf16.msra.mxu1 %v281_v8 }
  0x1e   :  { %240 = vmatmul.msk.bf16.vlgmr.msra.gmra.mxu0 %vm105_vm0, %v68_v9 }
  0x20   :  { %196 = vmatpush.bf16.msra.mxu1 %v280_v10 }
  0x24   :  { %197 = vmatpush.bf16.msra.mxu1 %v279_v11 }
  0x28   :  { %198 = vmatpush.bf16.msra.mxu1 %v278_v12 }
  0x2c   :  { %199 = vmatpush.bf16.msra.mxu1 %v277_v13 }
  0x9b   :  { %v118_v15 = vpop.f32.mrf.mxu0 }
  0x9c   :  { %v119_v16 = vadd.f32 %v291_v14, %v118_v15 }
  0x9e   :  { %v122_v17 = vmax.f32 %v119_v16, 0.0 }
  0xa0   :  { %v123_v18 = vpack.c.bf16 %v122_v17, %v122_v17 }
  0xa2   :  { %200 = vmatmul.bf16.vlgmr.msra.gmra.mxu1 %v123_v18 }
  0xa3   :  { %v120_v19 = vpop.f32.mrf.mxu0 }
 0x11f   :  { %v201_v21 = vpop.f32.mrf.mxu1 }
 0x120   :  { %v202_v22 = vadd.f32 %v292_v20, %v201_v21 }
 0x122   :  { %205 = vst [vmem:[#allocation8] sm:$0xff] %v202_v22 }
 0x123   :  { %216 = dma.vmem_to_hbm [thread:$0]  %s212_s12, 128, %s214_s15, [#allocation4]  }
 0x127   :  { %v203_v23 = vpop.f32.mrf.mxu1 }
 0x128   :  { %393 = dma.done.wait [#allocation4], 128  }
 0x129   :  { %394 = vsyncadd [#allocation4], 4294967168 }
 0x12a   :  { %221 = vsyncpa [#allocation3], 1 }
 0x12b   :  { %222 = vsyncpa [#allocation6], 1 }
 0x12c   :  { %223 = vsyncpa [#allocation4], 1 }

</bundles_post_ra>
